<compile_context>
chip_gen: v7x
topology: tpu7x:2x2x1
jax: 0.10.0
libtpu: 0.0.40
codegen_flags: <defaults>
</compile_context>

<pallas_src>
import jax
import jax.numpy as jnp
from jax.experimental import pallas as pl
from jax.experimental.pallas import tpu as pltpu


def _interp_matrix(n_out: int, n_in: int) -> jnp.ndarray:
    """Row-stochastic (n_out, n_in) matrix for 1-D linear interpolation with
    align_corners=True (PyTorch nn.Upsample semantics).

    Degenerate sizes (n_in == 1 or n_out == 1) put all weight on input index 0,
    which matches align_corners=True for those cases (single source sample /
    output sample 0 sits exactly on input sample 0)."""
    if n_out == 1 or n_in == 1:
        a = jnp.zeros((n_out, n_in), jnp.float32)
        return a.at[:, 0].set(1.0)
    src = jnp.arange(n_out, dtype=jnp.float32) * (n_in - 1) / (n_out - 1)
    lo = jnp.clip(jnp.floor(src).astype(jnp.int32), 0, n_in - 1)
    hi = jnp.clip(lo + 1, 0, n_in - 1)
    frac = src - lo.astype(jnp.float32)
    a = (1.0 - frac)[:, None] * jax.nn.one_hot(lo, n_in, dtype=jnp.float32)
    a = a + frac[:, None] * jax.nn.one_hot(hi, n_in, dtype=jnp.float32)
    return a


def _up_kernel(x_ref, kron_ref, w_ref, b_ref, o_ref):
    # x_ref:    (1, Nb*Cin, H*W)     activation slab (lane-dense: H*W % 128 == 0)
    # kron_ref: (H*W, Ho*Wo)         fused bilinear-interp matrix kron(A_h, A_w)^T
    # w_ref:    (Nb*Cout, Nb*Cin)    block-diagonal 1x1-conv weight kron(I_Nb, W)
    # b_ref:    (Nb*Cout, 1)         bias (row-broadcast)
    # o_ref:    (1, Nb*Cout, Ho*Wo)  output slab (lane-dense)
    #
    # Two plain 2-D MXU matmuls; no in-kernel transposes / reshapes / relayouts.
    x = x_ref[0].astype(jnp.float32)
    up = jnp.dot(x, kron_ref[...],
                 preferred_element_type=jnp.float32)       # (Nb*Cin, Ho*Wo), K = H*W
    out = jnp.dot(w_ref[...], up,
                  preferred_element_type=jnp.float32)      # (Nb*Cout, Ho*Wo)
    out = out + b_ref[...]                                 # f32 bias on f32 accum
    o_ref[0] = out.astype(o_ref.dtype)


def up_forward(x, conv_w, conv_b, scale_factor=2, out_dtype=None, batch_block=None):
    """UP.forward: bilinear upsample (align_corners=True) then 1x1 conv + bias.

    x: (N, Cin, H, W); conv_w: (Cout, Cin) or (Cout, Cin, 1, 1); conv_b: (Cout,).
    """
    n, c_in, h, w = x.shape
    conv_w = conv_w.reshape(conv_w.shape[0], -1)           # fold (Cout,Cin,1,1) -> (Cout,Cin)
    c_out = conv_w.shape[0]
    h_out, w_out = h * scale_factor, w * scale_factor
    out_dtype = x.dtype if out_dtype is None else out_dtype

    # Fused bilinear-interp matrix: up[:, i*Wo+j] = sum_{p,q} x[:, p*W+q] * K[p*W+q, i*Wo+j]
    # with K = kron(A_h, A_w)^T, shape (H*W, Ho*Wo).  Kept in f32 (tiny, constant
    # across the grid so it is DMA'd into VMEM only once).
    a_h = _interp_matrix(h_out, h)                         # (Ho, H)
    a_w = _interp_matrix(w_out, w)                         # (Wo, W)
    kron_t = jnp.kron(a_h, a_w).T.astype(jnp.float32)      # (H*W, Ho*Wo)

    # Fold several batch items per grid step (amortizes per-step pipeline
    # overhead) while keeping >=2 grid entries when N > 1 so both v7x
    # TensorCores get work on the "parallel" axis.
    if batch_block is None:
        batch_block = pl.cdiv(n, 2) if n > 1 else 1
        # Keep the per-step output block comfortably inside scoped VMEM.
        max_nb = max(1, (8 << 20) // (c_out * h_out * w_out * 4))
        batch_block = max(1, min(batch_block, max_nb))
    g = pl.cdiv(n, batch_block)
    n_pad = g * batch_block
    if n_pad != n:
        x = jnp.pad(x, ((0, n_pad - n), (0, 0), (0, 0), (0, 0)))

    # Lane-dense activation slab: (G, Nb*Cin, H*W) — pure metadata reshape.
    x_slab = x.reshape(g, batch_block * c_in, h * w)

    # Block-diagonal conv weight (applies W independently to each batch item of
    # the folded M dimension) and matching tiled bias.
    w_bd = jnp.kron(jnp.eye(batch_block, dtype=jnp.float32),
                    conv_w.astype(jnp.float32))            # (Nb*Cout, Nb*Cin)
    b_bd = jnp.tile(conv_b.astype(jnp.float32), batch_block).reshape(
        batch_block * c_out, 1)                            # (Nb*Cout, 1)

    out_slab = pl.pallas_call(
        _up_kernel,
        out_shape=jax.ShapeDtypeStruct(
            (g, batch_block * c_out, h_out * w_out), out_dtype),
        grid_spec=pltpu.PrefetchScalarGridSpec(
            num_scalar_prefetch=0,
            grid=(g,),
            in_specs=[
                pl.BlockSpec((1, batch_block * c_in, h * w), lambda i: (i, 0, 0)),
                pl.BlockSpec((h * w, h_out * w_out), lambda i: (0, 0)),
                pl.BlockSpec((batch_block * c_out, batch_block * c_in),
                             lambda i: (0, 0)),
                pl.BlockSpec((batch_block * c_out, 1), lambda i: (0, 0)),
            ],
            out_specs=pl.BlockSpec((1, batch_block * c_out, h_out * w_out),
                                   lambda i: (i, 0, 0)),
        ),
        compiler_params=pltpu.CompilerParams(
            dimension_semantics=("parallel",)),
    )(x_slab, kron_t, w_bd, b_bd)

    # Metadata-only reshapes back to NCHW; drop any batch padding.
    out = out_slab.reshape(n_pad, c_out, h_out, w_out)
    return out[:n]


def up_reference(x, conv_w, conv_b, scale_factor=2):
    """Plain-JAX f32 reference (upsample -> 1x1 conv -> bias), PyTorch order."""
    n, c_in, h, w = x.shape
    conv_w = conv_w.reshape(conv_w.shape[0], -1)
    a_h = _interp_matrix(h * scale_factor, h)
    a_w = _interp_matrix(w * scale_factor, w)
    up = jnp.einsum('nchw,Hh,Ww->ncHW', x.astype(jnp.float32), a_h, a_w)
    out = jnp.einsum('oc,ncHW->noHW', conv_w.astype(jnp.float32), up)
    return out + conv_b[None, :, None, None]


if __name__ == "__main__":
    key = jax.random.PRNGKey(0)
    k_x, k_w, k_b = jax.random.split(key, 3)

    N, C_IN, C_OUT, H, W = 2, 4, 8, 16, 16
    x = jax.random.normal(k_x, (N, C_IN, H, W), dtype=jnp.float32)
    # Conv2d(C_IN, C_OUT, kernel_size=1): weight (C_OUT, C_IN, 1, 1) folded to
    # (C_OUT, C_IN), bias (C_OUT,).
    conv_w = jax.random.normal(k_w, (C_OUT, C_IN), dtype=jnp.float32) * 0.1
    conv_b = jax.random.normal(k_b, (C_OUT,), dtype=jnp.float32) * 0.1

    out = jax.block_until_ready(up_forward(x, conv_w, conv_b, scale_factor=2))
    ref = jax.block_until_ready(up_reference(x, conv_w, conv_b, scale_factor=2))

    assert out.shape == (N, C_OUT, 2 * H, 2 * W), out.shape
    err = jnp.max(jnp.abs(out - ref))
    # Everything is f32 end to end now; tolerance only needs to cover MXU
    # accumulation-order / internal-pass differences.
    assert jnp.allclose(out, ref, atol=2e-2, rtol=2e-2), \
        f"mismatch vs reference (max abs err {err})"

    print("KERNEL_OK")
</pallas_src>

<mosaic_0001>
module attributes {stable_mosaic.version = 11 : i64} {
  func.func @_up_kernel(%arg0: i32, %arg1: memref<1x4x256xf32, #tpu.memory_space<vmem>>, %arg2: memref<256x1024xf32, #tpu.memory_space<vmem>>, %arg3: memref<8x4xf32, #tpu.memory_space<vmem>>, %arg4: memref<8x1xf32, #tpu.memory_space<vmem>>, %arg5: memref<1x8x1024xf32, #tpu.memory_space<vmem>>) attributes {dimension_semantics = [#tpu.dimension_semantics<parallel>], iteration_bounds = array<i64: 2>, scalar_prefetch = 0 : i64, scratch_operands = 0 : i64, tpu.core_type = #tpu.core_type<tc>, window_params = [{transform_indices = @transform_0, window_bounds = array<i64: 1, 4, 256>}, {pipeline_mode = #tpu.pipeline_mode<synchronous>, transform_indices = @transform_1, window_bounds = array<i64: 256, 1024>}, {pipeline_mode = #tpu.pipeline_mode<synchronous>, transform_indices = @transform_2, window_bounds = array<i64: 8, 4>}, {pipeline_mode = #tpu.pipeline_mode<synchronous>, transform_indices = @transform_3, window_bounds = array<i64: 8, 1>}, {transform_indices = @transform_4, window_bounds = array<i64: 1, 8, 1024>}]} {
    %c0 = arith.constant 0 : index
    %c0_0 = arith.constant 0 : index
    %c0_1 = arith.constant 0 : index
    %0 = vector.load %arg1[%c0, %c0_0, %c0_1] : memref<1x4x256xf32, #tpu.memory_space<vmem>>, vector<1x4x256xf32>
    %1 = vector.shape_cast %0 : vector<1x4x256xf32> to vector<4x256xf32>
    %c0_2 = arith.constant 0 : index
    %c0_3 = arith.constant 0 : index
    %2 = vector.load %arg2[%c0_2, %c0_3] : memref<256x1024xf32, #tpu.memory_space<vmem>>, vector<256x1024xf32>
    %cst = arith.constant dense<0.000000e+00> : vector<4x1024xf32>
    %3 = tpu.matmul %1, %2, %cst {dimension_numbers = #tpu.dot_dimension_numbers<[1], [0], [0], [1], [0, 0, 1, 1], [], []>} : vector<4x256xf32>, vector<256x1024xf32>, vector<4x1024xf32> -> vector<4x1024xf32>
    %c0_4 = arith.constant 0 : index
    %c0_5 = arith.constant 0 : index
    %4 = vector.load %arg3[%c0_4, %c0_5] : memref<8x4xf32, #tpu.memory_space<vmem>>, vector<8x4xf32>
    %cst_6 = arith.constant dense<0.000000e+00> : vector<8x1024xf32>
    %5 = tpu.matmul %4, %3, %cst_6 {dimension_numbers = #tpu.dot_dimension_numbers<[1], [0], [0], [1], [0, 0, 1, 1], [], []>} : vector<8x4xf32>, vector<4x1024xf32>, vector<8x1024xf32> -> vector<8x1024xf32>
    %c0_7 = arith.constant 0 : index
    %c0_8 = arith.constant 0 : index
    %6 = vector.load %arg4[%c0_7, %c0_8] : memref<8x1xf32, #tpu.memory_space<vmem>>, vector<8x1xf32>
    %7 = vector.broadcast %6 : vector<8x1xf32> to vector<8x1024xf32>
    %8 = arith.addf %5, %7 : vector<8x1024xf32>
    %c0_9 = arith.constant 0 : index
    %c0_10 = arith.constant 0 : index
    %c0_11 = arith.constant 0 : index
    %9 = vector.load %arg5[%c0_9, %c0_10, %c0_11] : memref<1x8x1024xf32, #tpu.memory_space<vmem>>, vector<1x8x1024xf32>
    %10 = vector.shape_cast %9 : vector<1x8x1024xf32> to vector<8x1024xf32>
    %11 = vector.shape_cast %8 : vector<8x1024xf32> to vector<1x8x1024xf32>
    tpu.vector_store %arg5[%c0_9, %c0_10, %c0_11], %11 {strides = array<i32>} : memref<1x8x1024xf32, #tpu.memory_space<vmem>>, vector<1x8x1024xf32>,
    return
  }
  func.func @transform_0(%arg0: i32) -> (i32, i32, i32) {
    %c0_i32 = arith.constant 0 : i32
    %c0_i32_0 = arith.constant 0 : i32
    %c0_i32_1 = arith.constant 0 : i32
    return %arg0, %c0_i32, %c0_i32_0 : i32, i32, i32
  }
  func.func @transform_1(%arg0: i32) -> (i32, i32) {
    %c0_i32 = arith.constant 0 : i32
    %c0_i32_0 = arith.constant 0 : i32
    %c0_i32_1 = arith.constant 0 : i32
    return %c0_i32, %c0_i32_0 : i32, i32
  }
  func.func @transform_2(%arg0: i32) -> (i32, i32) {
    %c0_i32 = arith.constant 0 : i32
    %c0_i32_0 = arith.constant 0 : i32
    %c0_i32_1 = arith.constant 0 : i32
    return %c0_i32, %c0_i32_0 : i32, i32
  }
  func.func @transform_3(%arg0: i32) -> (i32, i32) {
    %c0_i32 = arith.constant 0 : i32
    %c0_i32_0 = arith.constant 0 : i32
    %c0_i32_1 = arith.constant 0 : i32
    return %c0_i32, %c0_i32_0 : i32, i32
  }
  func.func @transform_4(%arg0: i32) -> (i32, i32, i32) {
    %c0_i32 = arith.constant 0 : i32
    %c0_i32_0 = arith.constant 0 : i32
    %c0_i32_1 = arith.constant 0 : i32
    return %arg0, %c0_i32, %c0_i32_0 : i32, i32, i32
  }
}

</mosaic_0001>

<bundles_post_ra>
// kernel: tpu_custom_call.1
= control target key start
LH: loop header
LB: loop body
LE: loop exit
PB: predicated region body
PF: predicated region fallthrough
CT: control target
= control target key end

     0   :  { %9 = vsyncpa [#allocation3], 0  ;;  %s1812_s0 = inlined_call_operand.vmem [shape: f32[2,4,256], index: 0, kind: input, shape index: {}]   ;;  %s1813_s1 = inlined_call_operand.hbm [shape: f32[256,1024], index: 1, kind: input, shape index: {}]   ;;  %s1814_s2 = inlined_call_operand.vmem [shape: f32[8,4], index: 2, kind: input, shape index: {}]   ;;  %s1815_s3 = inlined_call_operand.vmem [shape: f32[8,1], index: 3, kind: input, shape index: {}]   ;;  %s1816_s4 = inlined_call_operand.hbm [shape: f32[2,8,1024], index: 4, kind: output, shape index: {}]  }
   0x1   :  { %10 = vsyncpa [#allocation4], 0 }
   0x2   :  { %12 = vsyncpa [#allocation4 + $0x1], 0  ;;  %s1636_s15 = smov 0   ;;  %s1638_s16 = smov 0  }
   0x3   :  { %s1640_s17 = smov 0   ;;  %s1642_s18 = smov 0  }
   0x4 LB: > { %s1657_s19 = sadd.s32 4294967295, %s1603_s18   ;;  %s1169_s20 = sadd.s32 4294967294, %s1603_s18   ;;  %s1603_s18 = sphi %s1642_s18, %s1832_s18   ;;  %s1599_s17 = sphi %s1640_s17, %s1831_s17   ;;  %s1595_s16 = sphi %s1638_s16, %s1830_s16   ;;  %s1591_s15 = sphi %s1636_s15, %s1829_s15  }
   0x5   : > { %s1661_s21 = sadd.s32 1, %s1603_s18   ;;  %s114_s22 = sadd.s32 1, %s1599_s17 }
   0x6   : > { %s111_s23 = ssub.s32 %s1603_s18, %s1661_s21  ;;  %p124_p0 = scmp.ne.s32.totalorder %s1599_s17, %s1595_s16 }
   0x7   : > { %p112_p1 = scmp.eq.s32.totalorder %s111_s23, 0  ;;  %p125_p2 = scmp.eq.s32.totalorder %s1657_s19, 1 }
   0x8   : > { %p130_p3 = scmp.ne.s32.totalorder %s1595_s16, %s1591_s15  ;;  %p131_p4 = scmp.eq.s32.totalorder %s1169_s20, 1 }
   0x9   : > { %s1672_s24 = scalar_select %p112_p1, %s1599_s17, %s114_s22  }
   0xa   : > { %p1674_p5 = por %p125_p2, %p124_p0  ;;  %p1678_p6 = por %p131_p4, %p130_p3 }
   0xb   : > { %p1170_p7 = scmp.ge.s32.totalorder %s1603_s18, 1  ;;  %p138_p8 = scmp.lt.s32.totalorder %s1603_s18, 3 }
   0xc   : > { %s1820_s25 = scalar_select %p1674_p5, 1, 0 }
   0xd   : > { %s1821_s26 = scalar_select %p1678_p6, 1, 0 }
   0xe   : > { %p1817_p9 = scmp.eq.s32.totalorder %s1657_s19, 0  ;;  %p1685_p10 = pnand %p1170_p7, %p138_p8 }
   0xf   : > { %s1605_s28 = smov [#allocation2]   ;;  %s1509_s7 = scalar_lea.hbm %s1813_s1, 32768 }
  0x10   : > { %s1822_s27 = scalar_select %p1685_p10, 1, 0 }
  0x11   : > { %s150_s29 = sshll.u32 %s1605_s28, 4  ;;  %p1459_p11 = pneg %p1685_p10  ;;  %s151_s29 = int_to_ptr.vmem [resolvable:$true] %s150_s29 }
  0x12   : > { %p1510_p13 = scmp.ne.s32.totalorder %s1813_s1, %s1509_s7  ;;  %p1516_p3 = scmp.lt.u32.totalorder %s1509_s7, %s1813_s1 }
  0x13   : > { %p1693_p12 = pnand %p1817_p9, %p1459_p11 }
  0x15   : > { %p1511_p0 = pneg %p1693_p12 }
  0x17   : > { %p1512_p1 = pnand %p1511_p0, %p1510_p13 }
  0x19   : > { %p1513_p2 = pneg %p1512_p1 }
  0x1b   : > { %p1518_p4 = pnand %p1516_p3, %p1513_p2 }
  0x1d   : > { %1521 = shalt.err (!%p1518_p4)
}
  0x1e   : > { %s1522_s12 = scalar_lea.vmem %s151_s29, 32768  ;;  %p1530_p9 = scmp.lt.s32.totalorder %s151_s29, %s151_s29 }
  0x1f   : > { %p1523_p7 = scmp.ne.s32.totalorder %s151_s29, %s1522_s12  ;;  %p1531_p6 = scmp.lt.s32.totalorder %s1522_s12, %s1522_s12 }
  0x21   : > { %p1525_p8 = pnand %p1523_p7, %p1511_p0  ;;  %p1532_p5 = por %p1531_p6, %p1530_p9 }
  0x23   : > { %p1526_p11 = pneg %p1525_p8 }
  0x25   : > { %p1533_p10 = pnand %p1532_p5, %p1526_p11 }
  0x27   : > { %1536 = shalt.err (!%p1533_p10)
}
  0x28   : > { %s1606_s13 = smov 1024   ;;  %s1607_s14 = smov 64  }
  0x29   : > { %1462 = dma.hbm_to_vmem [thread:$0]  (!%p1693_p12), %s1813_s1, 32768, %s151_s29, [#allocation3], %s1606_s13, %s1606_s13, %s1607_s14  }
  0x2a   : > { %p1824_p13 = scmp.ne.s32.totalorder %s1822_s27, 0 }
  0x2b   : > { %p1825_p1 = scmp.eq.s32.totalorder (!%p1824_p13), %s1657_s19, 0 }
  0x2c   : > { %180 = sbr.rel (%p1824_p13) target bundleno = 629 (0x275), region = 36 }
  0x33   : > { %1582 = dma.done.wait (%p1825_p1), [#allocation3], 32768   ;;  %p1826_p0 = pmov %p1825_p1 }
  0x34   : > { %v213_v0 = vld [vmem:[#allocation2 + $0x8] sm:$0xff]  ;;  %v215_v2 = vld [vmem:[#allocation2 + $0x18] sm:$0xff]  ;;  %v212_v5 = vld [vmem:[#allocation2] sm:$0xff]  ;;  %p206_p5 = scmp.lt.s32.totalorder %s1657_s19, 1  ;;  %vm766_vm0 = vcmask 1043456   ;;  %vm762_vm1 = vcmask 31744  }
  0x35   : > { %1584 = vsyncadd (%p1826_p0), [#allocation3], 4294934528  ;;  %v221_v1 = vld [vmem:[#allocation2 + $0x48] sm:$0xff]  ;;  %v223_v4 = vld [vmem:[#allocation2 + $0x58] sm:$0xff]  ;;  %s203_s9 = sand.u32 1, %s1595_s16   ;;  %s1196_s12 = sshll.u32 %s1657_s19, 10 }
  0x36   : > { %v1197_v3 = vpack.c.bf16 %v221_v1, %v213_v0  ;;  %v220_v6 = vld [vmem:[#allocation2 + $0x40] sm:$0xff]  ;;  %v1261_v7 = vpack.c.bf16 %v223_v4, %v215_v2  ;;  %v214_v9 = vld [vmem:[#allocation2 + $0x10] sm:$0xff]  ;;  %v229_v11 = vld [vmem:[#allocation2 + $0x88] sm:$0xff]  ;;  %s1723_s23 = scalar_select %p206_p5, %s1657_s19, 1 }
  0x37   : > { %v1199_v8 = vpack.c.bf16 %v220_v6, %v212_v5  ;;  %v222_v10 = vld [vmem:[#allocation2 + $0x50] sm:$0xff]  ;;  %v237_v13 = vld [vmem:[#allocation2 + $0xc8] sm:$0xff]  ;;  %v231_v14 = vld [vmem:[#allocation2 + $0x98] sm:$0xff]  ;;  %s1175_s10 = sshll.u32 %s203_s9, 6  ;;  %s1768_s22 = scalar_lea.hbm %s1816_s4, %s1196_s12 }
  0x38   : > { %1198 = vmatprep.subr.bf16.mxu0 %v1197_v3  ;;  %v1263_v12 = vpack.c.bf16 %v222_v10, %v214_v9  ;;  %v239_v15 = vld [vmem:[#allocation2 + $0xd8] sm:$0xff]  ;;  %1262 = vmatprep.subr.bf16.mxu1 %v1261_v7  ;;  %v1201_v16 = vpack.c.bf16 %v237_v13, %v229_v11  ;;  %v228_v18 = vld [vmem:[#allocation2 + $0x80] sm:$0xff]  ;;  %v230_v20 = vld [vmem:[#allocation2 + $0x90] sm:$0xff]  ;;  %s1195_s27 = sshll.u32 %s1723_s23, 3  ;;  %s205_s11 = scalar_lea.vmem [#allocation5], %s1175_s10 }
  0x39   : > { %1200 = vmatpush1.bf16.msra.mxu0 %v1199_v8  ;;  %v1265_v17 = vpack.c.bf16 %v239_v15, %v231_v14  ;;  %v236_v19 = vld [vmem:[#allocation2 + $0xc0] sm:$0xff]  ;;  %v238_v22 = vld [vmem:[#allocation2 + $0xd0] sm:$0xff]  ;;  %v245_v23 = vld [vmem:[#allocation2 + $0x108] sm:$0xff]  ;;  %s210_s30 = scalar_lea.vmem %s1812_s0, %s1195_s27  ;;  %s1098_s13 = sshll.u32 %s205_s11, 4  ;;  %s1770_s13 = int_to_ptr.vmem [resolvable:$true] %s1098_s13 }
  0x3a   : > { %1264 = vmatpush1.bf16.msra.mxu1 %v1263_v12  ;;  %v1203_v21 = vpack.c.bf16 %v236_v19, %v228_v18  ;;  %v253_v24 = vld [vmem:[#allocation2 + $0x148] sm:$0xff]  ;;  %1202 = vmatprep.subr.bf16.mxu0 %v1201_v16  ;;  %v1267_v25 = vpack.c.bf16 %v238_v22, %v230_v20  ;;  %v247_v27 = vld [vmem:[#allocation2 + $0x118] sm:$0xff]  ;;  %v244_v29 = vld [vmem:[#allocation2 + $0x100] sm:$0xff]  ;;  %s1084_s19 = scalar_lea.sflag [#allocation4], %s203_s9  ;;  %s1537_s23 = scalar_lea.vmem %s1770_s13, 1024 }
  0x3b   : > { %1266 = vmatprep.subr.bf16.mxu1 %v1265_v17  ;;  %v1205_v26 = vpack.c.bf16 %v253_v24, %v245_v23  ;;  %v255_v28 = vld [vmem:[#allocation2 + $0x158] sm:$0xff]  ;;  %v252_v31 = vld [vmem:[#allocation2 + $0x140] sm:$0xff]  ;;  %v246_v32 = vld [vmem:[#allocation2 + $0x110] sm:$0xff]  ;;  %p1538_p6 = scmp.ne.s32.totalorder %s1770_s13, %s1537_s23  ;;  %p1827_p9 = scmp.ne.s32.totalorder %s1820_s25, 0 }
  0x3c   : > { %v1269_v30 = vpack.c.bf16 %v255_v28, %v247_v27  ;;  %v254_v33 = vld [vmem:[#allocation2 + $0x150] sm:$0xff]  ;;  %v1207_v34 = vpack.c.bf16 %v252_v31, %v244_v29  ;;  %v261_v35 = vld [vmem:[#allocation2 + $0x188] sm:$0xff]  ;;  %v263_v37 = vld [vmem:[#allocation2 + $0x198] sm:$0xff]  ;;  %s1610_s27 = smov [#allocation5]  }
  0x3d   : > { %1204 = vmatpush1.bf16.msra.mxu0 %v1203_v21  ;;  %v269_v36 = vld [vmem:[#allocation2 + $0x1c8] sm:$0xff]  ;;  %v1271_v38 = vpack.c.bf16 %v254_v33, %v246_v32  ;;  %v271_v40 = vld [vmem:[#allocation2 + $0x1d8] sm:$0xff]  ;;  %v260_v41 = vld [vmem:[#allocation2 + $0x180] sm:$0xff]  ;;  %p1539_p10 = pnand %p1538_p6, %p1827_p9  ;;  %s1541_s28 = sshll.u32 %s1610_s27, 4  ;;  %s1542_s28 = int_to_ptr.vmem [resolvable:$false] %s1541_s28 }
  0x3e   : > { %1268 = vmatpush1.bf16.msra.mxu1 %v1267_v25  ;;  %1206 = vmatprep.subr.bf16.mxu0 %v1205_v26  ;;  %v1209_v39 = vpack.c.bf16 %v269_v36, %v261_v35  ;;  %v268_v42 = vld [vmem:[#allocation2 + $0x1c0] sm:$0xff]  ;;  %v1273_v43 = vpack.c.bf16 %v271_v40, %v263_v37  ;;  %v262_v44 = vld [vmem:[#allocation2 + $0x190] sm:$0xff]  ;;  %v277_v46 = vld [vmem:[#allocation2 + $0x208] sm:$0xff]  ;;  %s1543_s29 = scalar_lea.vmem %s1542_s28, 2048  ;;  %p1544_p2 = scmp.lt.s32.totalorder %s1770_s13, %s1542_s28 }
  0x3f   : > { %1270 = vmatprep.subr.bf16.mxu1 %v1269_v30  ;;  %v270_v45 = vld [vmem:[#allocation2 + $0x1d0] sm:$0xff]  ;;  %v285_v47 = vld [vmem:[#allocation2 + $0x248] sm:$0xff]  ;;  %v279_v48 = vld [vmem:[#allocation2 + $0x218] sm:$0xff]  ;;  %v1211_v50 = vpack.c.bf16 %v268_v42, %v260_v41  ;;  %p1540_p12 = pneg %p1539_p10  ;;  %p1545_p3 = scmp.lt.s32.totalorder %s1543_s29, %s1537_s23 }
  0x40   : > { %v287_v49 = vld [vmem:[#allocation2 + $0x258] sm:$0xff]  ;;  %v1275_v51 = vpack.c.bf16 %v270_v45, %v262_v44  ;;  %v1213_v52 = vpack.c.bf16 %v285_v47, %v277_v46  ;;  %v276_v53 = vld [vmem:[#allocation2 + $0x200] sm:$0xff]  ;;  %v278_v55 = vld [vmem:[#allocation2 + $0x210] sm:$0xff] }
  0x41   : > { %1208 = vmatpush1.bf16.msra.mxu0 %v1207_v34  ;;  %v284_v54 = vld [vmem:[#allocation2 + $0x240] sm:$0xff]  ;;  %v1277_v56 = vpack.c.bf16 %v287_v49, %v279_v48  ;;  %v286_v57 = vld [vmem:[#allocation2 + $0x250] sm:$0xff]  ;;  %v293_v58 = vld [vmem:[#allocation2 + $0x288] sm:$0xff]  ;;  %p1546_p4 = por %p1545_p3, %p1544_p2 }
  0x42   : > { %1272 = vmatpush1.bf16.msra.mxu1 %v1271_v38  ;;  %1210 = vmatprep.subr.bf16.mxu0 %v1209_v39  ;;  %v301_v59 = vld [vmem:[#allocation2 + $0x2c8] sm:$0xff]  ;;  %v295_v60 = vld [vmem:[#allocation2 + $0x298] sm:$0xff]  ;;  %v1215_v62 = vpack.c.bf16 %v284_v54, %v276_v53  ;;  %v1279_v63 = vpack.c.bf16 %v286_v57, %v278_v55  ;;  %v292_v1 = vld [vmem:[#allocation2 + $0x280] sm:$0xff] }
  0x43   : > { %1274 = vmatprep.subr.bf16.mxu1 %v1273_v43  ;;  %v303_v61 = vld [vmem:[#allocation2 + $0x2d8] sm:$0xff]  ;;  %v1217_v0 = vpack.c.bf16 %v301_v59, %v293_v58  ;;  %v300_v2 = vld [vmem:[#allocation2 + $0x2c0] sm:$0xff]  ;;  %v294_v3 = vld [vmem:[#allocation2 + $0x290] sm:$0xff]  ;;  %p1547_p7 = pnand %p1546_p4, %p1540_p12 }
  0x44   : > { %v1281_v4 = vpack.c.bf16 %v303_v61, %v295_v60  ;;  %v302_v5 = vld [vmem:[#allocation2 + $0x2d0] sm:$0xff]  ;;  %v309_v6 = vld [vmem:[#allocation2 + $0x308] sm:$0xff]  ;;  %v311_v8 = vld [vmem:[#allocation2 + $0x318] sm:$0xff]  ;;  %v1219_v10 = vpack.c.bf16 %v300_v2, %v292_v1 }
  0x45   : > { %1212 = vmatpush1.bf16.msra.mxu0 %v1211_v50  ;;  %v317_v7 = vld [vmem:[#allocation2 + $0x348] sm:$0xff]  ;;  %v319_v9 = vld [vmem:[#allocation2 + $0x358] sm:$0xff]  ;;  %v1283_v11 = vpack.c.bf16 %v302_v5, %v294_v3  ;;  %v308_v13 = vld [vmem:[#allocation2 + $0x300] sm:$0xff] }
  0x46   : > { %1276 = vmatpush1.bf16.msra.mxu1 %v1275_v51  ;;  %1214 = vmatprep.subr.bf16.mxu0 %v1213_v52  ;;  %v1221_v12 = vpack.c.bf16 %v317_v7, %v309_v6  ;;  %v316_v14 = vld [vmem:[#allocation2 + $0x340] sm:$0xff]  ;;  %v310_v15 = vld [vmem:[#allocation2 + $0x310] sm:$0xff]  ;;  %v1285_v16 = vpack.c.bf16 %v319_v9, %v311_v8  ;;  %v325_v18 = vld [vmem:[#allocation2 + $0x388] sm:$0xff] }
  0x47   : > { %1278 = vmatprep.subr.bf16.mxu1 %v1277_v56  ;;  %v318_v17 = vld [vmem:[#allocation2 + $0x350] sm:$0xff]  ;;  %v333_v19 = vld [vmem:[#allocation2 + $0x3c8] sm:$0xff]  ;;  %v327_v20 = vld [vmem:[#allocation2 + $0x398] sm:$0xff]  ;;  %v1223_v22 = vpack.c.bf16 %v316_v14, %v308_v13 }
  0x48   : > { %v335_v21 = vld [vmem:[#allocation2 + $0x3d8] sm:$0xff]  ;;  %v1287_v23 = vpack.c.bf16 %v318_v17, %v310_v15  ;;  %v1225_v24 = vpack.c.bf16 %v333_v19, %v325_v18  ;;  %v324_v25 = vld [vmem:[#allocation2 + $0x380] sm:$0xff]  ;;  %v326_v27 = vld [vmem:[#allocation2 + $0x390] sm:$0xff] }
  0x49   : > { %1216 = vmatpush1.bf16.msra.mxu0 %v1215_v62  ;;  %v332_v26 = vld [vmem:[#allocation2 + $0x3c0] sm:$0xff]  ;;  %v1289_v28 = vpack.c.bf16 %v335_v21, %v327_v20  ;;  %v334_v29 = vld [vmem:[#allocation2 + $0x3d0] sm:$0xff]  ;;  %v341_v30 = vld [vmem:[#allocation2 + $0x408] sm:$0xff] }
  0x4a   : > { %1280 = vmatpush1.bf16.msra.mxu1 %v1279_v63  ;;  %1218 = vmatprep.subr.bf16.mxu0 %v1217_v0  ;;  %v349_v31 = vld [vmem:[#allocation2 + $0x448] sm:$0xff]  ;;  %v343_v32 = vld [vmem:[#allocation2 + $0x418] sm:$0xff]  ;;  %v1227_v34 = vpack.c.bf16 %v332_v26, %v324_v25  ;;  %v1291_v35 = vpack.c.bf16 %v334_v29, %v326_v27  ;;  %v340_v37 = vld [vmem:[#allocation2 + $0x400] sm:$0xff] }
  0x4b   : > { %1282 = vmatprep.subr.bf16.mxu1 %v1281_v4  ;;  %v351_v33 = vld [vmem:[#allocation2 + $0x458] sm:$0xff]  ;;  %v1229_v36 = vpack.c.bf16 %v349_v31, %v341_v30  ;;  %v348_v38 = vld [vmem:[#allocation2 + $0x440] sm:$0xff]  ;;  %v342_v39 = vld [vmem:[#allocation2 + $0x410] sm:$0xff] }
  0x4c   : > { %v1293_v40 = vpack.c.bf16 %v351_v33, %v343_v32  ;;  %v350_v41 = vld [vmem:[#allocation2 + $0x450] sm:$0xff]  ;;  %v357_v42 = vld [vmem:[#allocation2 + $0x488] sm:$0xff]  ;;  %v359_v44 = vld [vmem:[#allocation2 + $0x498] sm:$0xff]  ;;  %v1231_v46 = vpack.c.bf16 %v348_v38, %v340_v37 }
  0x4d   : > { %1220 = vmatpush1.bf16.msra.mxu0 %v1219_v10  ;;  %v365_v43 = vld [vmem:[#allocation2 + $0x4c8] sm:$0xff]  ;;  %v367_v45 = vld [vmem:[#allocation2 + $0x4d8] sm:$0xff]  ;;  %v1295_v47 = vpack.c.bf16 %v350_v41, %v342_v39  ;;  %v356_v49 = vld [vmem:[#allocation2 + $0x480] sm:$0xff] }
  0x4e   : > { %1284 = vmatpush1.bf16.msra.mxu1 %v1283_v11  ;;  %1222 = vmatprep.subr.bf16.mxu0 %v1221_v12  ;;  %v1233_v48 = vpack.c.bf16 %v365_v43, %v357_v42  ;;  %v364_v50 = vld [vmem:[#allocation2 + $0x4c0] sm:$0xff]  ;;  %v358_v51 = vld [vmem:[#allocation2 + $0x490] sm:$0xff]  ;;  %v1297_v52 = vpack.c.bf16 %v367_v45, %v359_v44  ;;  %v373_v54 = vld [vmem:[#allocation2 + $0x508] sm:$0xff] }
  0x4f   : > { %1286 = vmatprep.subr.bf16.mxu1 %v1285_v16  ;;  %v366_v53 = vld [vmem:[#allocation2 + $0x4d0] sm:$0xff]  ;;  %v381_v55 = vld [vmem:[#allocation2 + $0x548] sm:$0xff]  ;;  %v375_v56 = vld [vmem:[#allocation2 + $0x518] sm:$0xff]  ;;  %v1235_v58 = vpack.c.bf16 %v364_v50, %v356_v49 }
  0x50   : > { %v383_v57 = vld [vmem:[#allocation2 + $0x558] sm:$0xff]  ;;  %v1299_v59 = vpack.c.bf16 %v366_v53, %v358_v51  ;;  %v1237_v60 = vpack.c.bf16 %v381_v55, %v373_v54  ;;  %v372_v61 = vld [vmem:[#allocation2 + $0x500] sm:$0xff]  ;;  %v374_v63 = vld [vmem:[#allocation2 + $0x510] sm:$0xff] }
  0x51   : > { %1224 = vmatpush1.bf16.msra.mxu0 %v1223_v22  ;;  %v380_v62 = vld [vmem:[#allocation2 + $0x540] sm:$0xff]  ;;  %v1301_v0 = vpack.c.bf16 %v383_v57, %v375_v56  ;;  %v382_v1 = vld [vmem:[#allocation2 + $0x550] sm:$0xff]  ;;  %v389_v2 = vld [vmem:[#allocation2 + $0x588] sm:$0xff] }
  0x52   : > { %1288 = vmatpush1.bf16.msra.mxu1 %v1287_v23  ;;  %1226 = vmatprep.subr.bf16.mxu0 %v1225_v24  ;;  %v397_v3 = vld [vmem:[#allocation2 + $0x5c8] sm:$0xff]  ;;  %v391_v4 = vld [vmem:[#allocation2 + $0x598] sm:$0xff]  ;;  %v1239_v6 = vpack.c.bf16 %v380_v62, %v372_v61  ;;  %v388_v7 = vld [vmem:[#allocation2 + $0x580] sm:$0xff]  ;;  %v1303_v8 = vpack.c.bf16 %v382_v1, %v374_v63 }
  0x53   : > { %1290 = vmatprep.subr.bf16.mxu1 %v1289_v28  ;;  %v399_v5 = vld [vmem:[#allocation2 + $0x5d8] sm:$0xff]  ;;  %v1241_v9 = vpack.c.bf16 %v397_v3, %v389_v2  ;;  %v396_v10 = vld [vmem:[#allocation2 + $0x5c0] sm:$0xff]  ;;  %v390_v11 = vld [vmem:[#allocation2 + $0x590] sm:$0xff] }
  0x54   : > { %v398_v12 = vld [vmem:[#allocation2 + $0x5d0] sm:$0xff]  ;;  %v1305_v13 = vpack.c.bf16 %v399_v5, %v391_v4  ;;  %v405_v14 = vld [vmem:[#allocation2 + $0x608] sm:$0xff]  ;;  %v1729_v16 = vld [vmem:[%s210_s30] sm:$0xff]  ;;  %v1243_v20 = vpack.c.bf16 %v396_v10, %v388_v7 }
  0x55   : > { %1228 = vmatpush1.bf16.msra.mxu0 %v1227_v34  ;;  %v413_v15 = vld [vmem:[#allocation2 + $0x648] sm:$0xff]  ;;  %v407_v17 = vld [vmem:[#allocation2 + $0x618] sm:$0xff]  ;;  %v1733_v19 = vcombine.high %v1729_v16, %v1729_v16  ;;  %v1307_v21 = vpack.c.bf16 %v398_v12, %v390_v11  ;;  %v404_v23 = vld [vmem:[#allocation2 + $0x600] sm:$0xff] }
  0x56   : > { %1292 = vmatpush1.bf16.msra.mxu1 %v1291_v35  ;;  %1230 = vmatprep.subr.bf16.mxu0 %v1229_v36  ;;  %v415_v18 = vld [vmem:[#allocation2 + $0x658] sm:$0xff]  ;;  %v1245_v22 = vpack.c.bf16 %v413_v15, %v405_v14  ;;  %v412_v24 = vld [vmem:[#allocation2 + $0x640] sm:$0xff]  ;;  %v406_v25 = vld [vmem:[#allocation2 + $0x610] sm:$0xff] }
  0x57   : > { %1294 = vmatprep.subr.bf16.mxu1 %v1293_v40  ;;  %v1309_v26 = vpack.c.bf16 %v415_v18, %v407_v17  ;;  %v414_v27 = vld [vmem:[#allocation2 + $0x650] sm:$0xff]  ;;  %v421_v28 = vld [vmem:[#allocation2 + $0x688] sm:$0xff]  ;;  %535 = vmatprep.mubr.f32.mxu0 %v1733_v19  ;;  %v423_v30 = vld [vmem:[#allocation2 + $0x698] sm:$0xff]  ;;  %v1247_v32 = vpack.c.bf16 %v412_v24, %v404_v23 }
  0x58   : > { %v429_v29 = vld [vmem:[#allocation2 + $0x6c8] sm:$0xff]  ;;  %v431_v31 = vld [vmem:[#allocation2 + $0x6d8] sm:$0xff]  ;;  %606 = vmatprep.mubr.f32.mxu1 %v1733_v19  ;;  %v1311_v33 = vpack.c.bf16 %v414_v27, %v406_v25  ;;  %v420_v35 = vld [vmem:[#allocation2 + $0x680] sm:$0xff] }
  0x59   : > { %1232 = vmatpush1.bf16.msra.mxu0 %v1231_v46  ;;  %v1249_v34 = vpack.c.bf16 %v429_v29, %v421_v28  ;;  %v428_v36 = vld [vmem:[#allocation2 + $0x6c0] sm:$0xff]  ;;  %v422_v37 = vld [vmem:[#allocation2 + $0x690] sm:$0xff]  ;;  %v1313_v38 = vpack.c.bf16 %v431_v31, %v423_v30  ;;  %v437_v40 = vld [vmem:[#allocation2 + $0x708] sm:$0xff] }
  0x5a   : > { %1296 = vmatpush1.bf16.msra.mxu1 %v1295_v47  ;;  %1234 = vmatprep.subr.bf16.mxu0 %v1233_v48  ;;  %v430_v39 = vld [vmem:[#allocation2 + $0x6d0] sm:$0xff]  ;;  %v445_v41 = vld [vmem:[#allocation2 + $0x748] sm:$0xff]  ;;  %v439_v42 = vld [vmem:[#allocation2 + $0x718] sm:$0xff]  ;;  %v1251_v44 = vpack.c.bf16 %v428_v36, %v420_v35 }
  0x5b   : > { %1298 = vmatprep.subr.bf16.mxu1 %v1297_v52  ;;  %v447_v43 = vld [vmem:[#allocation2 + $0x758] sm:$0xff]  ;;  %v1315_v45 = vpack.c.bf16 %v430_v39, %v422_v37  ;;  %v1253_v46 = vpack.c.bf16 %v445_v41, %v437_v40  ;;  %v436_v47 = vld [vmem:[#allocation2 + $0x700] sm:$0xff]  ;;  %v438_v49 = vld [vmem:[#allocation2 + $0x710] sm:$0xff] }
  0x5c   : > { %v444_v48 = vld [vmem:[#allocation2 + $0x740] sm:$0xff]  ;;  %v1317_v50 = vpack.c.bf16 %v447_v43, %v439_v42  ;;  %v446_v51 = vld [vmem:[#allocation2 + $0x750] sm:$0xff]  ;;  %v453_v52 = vld [vmem:[#allocation2 + $0x788] sm:$0xff] }
  0x5d   : > { %1236 = vmatpush1.bf16.msra.mxu0 %v1235_v58  ;;  %v461_v53 = vld [vmem:[#allocation2 + $0x7c8] sm:$0xff]  ;;  %v455_v54 = vld [vmem:[#allocation2 + $0x798] sm:$0xff]  ;;  %v1255_v56 = vpack.c.bf16 %v444_v48, %v436_v47  ;;  %v1319_v57 = vpack.c.bf16 %v446_v51, %v438_v49  ;;  %v454_v61 = vld [vmem:[#allocation2 + $0x790] sm:$0xff] }
  0x5e   : > { %1300 = vmatpush1.bf16.msra.mxu1 %v1299_v59  ;;  %1238 = vmatprep.subr.bf16.mxu0 %v1237_v60  ;;  %v463_v55 = vld [vmem:[#allocation2 + $0x7d8] sm:$0xff]  ;;  %v1257_v58 = vpack.c.bf16 %v461_v53, %v453_v52  ;;  %v452_v59 = vld [vmem:[#allocation2 + $0x780] sm:$0xff]  ;;  %v462_v63 = vld [vmem:[#allocation2 + $0x7d0] sm:$0xff] }
  0x5f   : > { %1302 = vmatprep.subr.bf16.mxu1 %v1301_v0  ;;  %v460_v60 = vld [vmem:[#allocation2 + $0x7c0] sm:$0xff]  ;;  %v1321_v62 = vpack.c.bf16 %v463_v55, %v455_v54  ;;  %v217_v0 = vld [vmem:[#allocation2 + $0x28] sm:$0xff]  ;;  %v219_v2 = vld [vmem:[#allocation2 + $0x38] sm:$0xff]  ;;  %v1323_v5 = vpack.c.bf16 %v462_v63, %v454_v61 }
  0x60   : > { %v225_v1 = vld [vmem:[#allocation2 + $0x68] sm:$0xff]  ;;  %v227_v3 = vld [vmem:[#allocation2 + $0x78] sm:$0xff]  ;;  %v1259_v4 = vpack.c.bf16 %v460_v60, %v452_v59  ;;  %v216_v7 = vld [vmem:[#allocation2 + $0x20] sm:$0xff] }
  0x61   : > { %1240 = vmatpush1.bf16.msra.mxu0 %v1239_v6  ;;  %v1325_v6 = vpack.c.bf16 %v225_v1, %v217_v0  ;;  %v1389_v10 = vpack.c.bf16 %v227_v3, %v219_v2  ;;  %v226_v11 = vld [vmem:[#allocation2 + $0x70] sm:$0xff]  ;;  %v233_v12 = vld [vmem:[#allocation2 + $0xa8] sm:$0xff]  ;;  %v235_v14 = vld [vmem:[#allocation2 + $0xb8] sm:$0xff] }
  0x62   : > { %1304 = vmatpush1.bf16.msra.mxu1 %v1303_v8  ;;  %1242 = vmatprep.subr.bf16.mxu0 %v1241_v9  ;;  %v224_v8 = vld [vmem:[#allocation2 + $0x60] sm:$0xff]  ;;  %v218_v9 = vld [vmem:[#allocation2 + $0x30] sm:$0xff]  ;;  %v243_v15 = vld [vmem:[#allocation2 + $0xf8] sm:$0xff] }
  0x63   : > { %1306 = vmatprep.subr.bf16.mxu1 %v1305_v13  ;;  %v241_v13 = vld [vmem:[#allocation2 + $0xe8] sm:$0xff]  ;;  %v1327_v17 = vpack.c.bf16 %v224_v8, %v216_v7  ;;  %v1391_v18 = vpack.c.bf16 %v226_v11, %v218_v9  ;;  %v234_v23 = vld [vmem:[#allocation2 + $0xb0] sm:$0xff]  ;;  %v1393_v24 = vpack.c.bf16 %v243_v15, %v235_v14  ;;  %v251_v28 = vld [vmem:[#allocation2 + $0x138] sm:$0xff] }
  0x64   : > { %v242_v25 = vld [vmem:[#allocation2 + $0xf0] sm:$0xff]  ;;  %v257_v27 = vld [vmem:[#allocation2 + $0x168] sm:$0xff]  ;;  %v259_v29 = vld [vmem:[#allocation2 + $0x178] sm:$0xff] }
  0x65   : > { %1244 = vmatpush1.bf16.msra.mxu0 %v1243_v20  ;;  %v1329_v20 = vpack.c.bf16 %v241_v13, %v233_v12  ;;  %v1395_v31 = vpack.c.bf16 %v242_v25, %v234_v23  ;;  %v250_v35 = vld [vmem:[#allocation2 + $0x130] sm:$0xff]  ;;  %v1397_v36 = vpack.c.bf16 %v259_v29, %v251_v28  ;;  %v273_v39 = vld [vmem:[#allocation2 + $0x1e8] sm:$0xff]  ;;  %v267_v40 = vld [vmem:[#allocation2 + $0x1b8] sm:$0xff] }
  0x66   : > { %1308 = vmatpush1.bf16.msra.mxu1 %v1307_v21  ;;  %1246 = vmatprep.subr.bf16.mxu0 %v1245_v22  ;;  %v232_v21 = vld [vmem:[#allocation2 + $0xa0] sm:$0xff]  ;;  %v258_v37 = vld [vmem:[#allocation2 + $0x170] sm:$0xff]  ;;  %v275_v41 = vld [vmem:[#allocation2 + $0x1f8] sm:$0xff] }
  0x67   : > { %1310 = vmatprep.subr.bf16.mxu1 %v1309_v26  ;;  %v240_v22 = vld [vmem:[#allocation2 + $0xe0] sm:$0xff]  ;;  %v249_v26 = vld [vmem:[#allocation2 + $0x128] sm:$0xff]  ;;  %v1399_v43 = vpack.c.bf16 %v258_v37, %v250_v35  ;;  %v266_v47 = vld [vmem:[#allocation2 + $0x1b0] sm:$0xff]  ;;  %v1401_v48 = vpack.c.bf16 %v275_v41, %v267_v40 }
  0x68   : > { %v1331_v30 = vpack.c.bf16 %v240_v22, %v232_v21  ;;  %v274_v49 = vld [vmem:[#allocation2 + $0x1f0] sm:$0xff]  ;;  %v289_v51 = vld [vmem:[#allocation2 + $0x268] sm:$0xff]  ;;  %v283_v52 = vld [vmem:[#allocation2 + $0x238] sm:$0xff] }
  0x69   : > { %1248 = vmatpush1.bf16.msra.mxu0 %v1247_v32  ;;  %v1333_v32 = vpack.c.bf16 %v257_v27, %v249_v26  ;;  %v291_v53 = vld [vmem:[#allocation2 + $0x278] sm:$0xff]  ;;  %v290_v60 = vld [vmem:[#allocation2 + $0x270] sm:$0xff]  ;;  %v297_v61 = vld [vmem:[#allocation2 + $0x2a8] sm:$0xff] }
  0x6a   : > { %1312 = vmatpush1.bf16.msra.mxu1 %v1311_v33  ;;  %1250 = vmatprep.subr.bf16.mxu0 %v1249_v34  ;;  %v248_v33 = vld [vmem:[#allocation2 + $0x120] sm:$0xff]  ;;  %v1405_v59 = vpack.c.bf16 %v291_v53, %v283_v52  ;;  %v299_v63 = vld [vmem:[#allocation2 + $0x2b8] sm:$0xff]  ;;  %v306_v8 = vld [vmem:[#allocation2 + $0x2f0] sm:$0xff] }
  0x6b   : > { %1314 = vmatprep.subr.bf16.mxu1 %v1313_v38  ;;  %v256_v34 = vld [vmem:[#allocation2 + $0x160] sm:$0xff]  ;;  %v265_v38 = vld [vmem:[#allocation2 + $0x1a8] sm:$0xff]  ;;  %v307_v0 = vld [vmem:[#allocation2 + $0x2f8] sm:$0xff] }
  0x6c   : > { %v1335_v42 = vpack.c.bf16 %v256_v34, %v248_v33  ;;  %v1409_v7 = vpack.c.bf16 %v307_v0, %v299_v63  ;;  %v313_v9 = vld [vmem:[#allocation2 + $0x328] sm:$0xff]  ;;  %v315_v11 = vld [vmem:[#allocation2 + $0x338] sm:$0xff]  ;;  %v322_v22 = vld [vmem:[#allocation2 + $0x370] sm:$0xff] }
  0x6d   : > { %1252 = vmatpush1.bf16.msra.mxu0 %v1251_v44  ;;  %v1337_v44 = vpack.c.bf16 %v273_v39, %v265_v38  ;;  %v323_v12 = vld [vmem:[#allocation2 + $0x378] sm:$0xff]  ;;  %v329_v23 = vld [vmem:[#allocation2 + $0x3a8] sm:$0xff]  ;;  %v338_v34 = vld [vmem:[#allocation2 + $0x3f0] sm:$0xff] }
  0x6e   : > { %1316 = vmatpush1.bf16.msra.mxu1 %v1315_v45  ;;  %1254 = vmatprep.subr.bf16.mxu0 %v1253_v46  ;;  %v264_v45 = vld [vmem:[#allocation2 + $0x1a0] sm:$0xff]  ;;  %v1413_v21 = vpack.c.bf16 %v323_v12, %v315_v11  ;;  %v331_v25 = vld [vmem:[#allocation2 + $0x3b8] sm:$0xff]  ;;  %v345_v35 = vld [vmem:[#allocation2 + $0x428] sm:$0xff] }
  0x6f   : > { %1318 = vmatprep.subr.bf16.mxu1 %v1317_v50  ;;  %v272_v46 = vld [vmem:[#allocation2 + $0x1e0] sm:$0xff]  ;;  %v281_v50 = vld [vmem:[#allocation2 + $0x228] sm:$0xff]  ;;  %v339_v26 = vld [vmem:[#allocation2 + $0x3f8] sm:$0xff] }
  0x70   : > { %v1339_v54 = vpack.c.bf16 %v272_v46, %v264_v45  ;;  %v1341_v55 = vpack.c.bf16 %v289_v51, %v281_v50  ;;  %v1417_v33 = vpack.c.bf16 %v339_v26, %v331_v25  ;;  %v347_v37 = vld [vmem:[#allocation2 + $0x438] sm:$0xff]  ;;  %v354_v46 = vld [vmem:[#allocation2 + $0x470] sm:$0xff] }
  0x71   : > { %1256 = vmatpush1.bf16.msra.mxu0 %v1255_v56  ;;  %v280_v56 = vld [vmem:[#allocation2 + $0x220] sm:$0xff]  ;;  %v355_v38 = vld [vmem:[#allocation2 + $0x478] sm:$0xff] }
  0x72   : > { %1320 = vmatpush1.bf16.msra.mxu1 %v1319_v57  ;;  %1258 = vmatprep.subr.bf16.mxu0 %v1257_v58  ;;  %v288_v57 = vld [vmem:[#allocation2 + $0x260] sm:$0xff]  ;;  %v282_v58 = vld [vmem:[#allocation2 + $0x230] sm:$0xff]  ;;  %v1421_v45 = vpack.c.bf16 %v355_v38, %v347_v37  ;;  %v371_v50 = vld [vmem:[#allocation2 + $0x4f8] sm:$0xff] }
  0x73   : > { %1322 = vmatprep.subr.bf16.mxu1 %v1321_v62  ;;  %v305_v62 = vld [vmem:[#allocation2 + $0x2e8] sm:$0xff]  ;;  %v1343_v1 = vpack.c.bf16 %v288_v57, %v280_v56  ;;  %v1407_v2 = vpack.c.bf16 %v290_v60, %v282_v58  ;;  %v370_v57 = vld [vmem:[#allocation2 + $0x4f0] sm:$0xff]  ;;  %v379_v60 = vld [vmem:[#allocation2 + $0x538] sm:$0xff] }
  0x74   : > { %v1345_v3 = vpack.c.bf16 %v305_v62, %v297_v61  ;;  %v377_v58 = vld [vmem:[#allocation2 + $0x528] sm:$0xff]  ;;  %v387_v61 = vld [vmem:[#allocation2 + $0x578] sm:$0xff] }
  0x75   : > { %1260 = vmatpush1.bf16.msra.mxu0 %v1259_v4  ;;  %v296_v4 = vld [vmem:[#allocation2 + $0x2a0] sm:$0xff] }
  0x76   : > { %1324 = vmatpush1.bf16.msra.mxu1 %v1323_v5  ;;  %1326 = vmatprep.subr.bf16.mxu0 %v1325_v6  ;;  %v304_v5 = vld [vmem:[#allocation2 + $0x2e0] sm:$0xff]  ;;  %v298_v6 = vld [vmem:[#allocation2 + $0x2b0] sm:$0xff] }
  0x77   : > { %1390 = vmatprep.subr.bf16.mxu1 %v1389_v10  ;;  %v321_v10 = vld [vmem:[#allocation2 + $0x368] sm:$0xff]  ;;  %v1347_v13 = vpack.c.bf16 %v304_v5, %v296_v4  ;;  %v1411_v14 = vpack.c.bf16 %v306_v8, %v298_v6  ;;  %v1429_v4 = vpack.c.bf16 %v387_v61, %v379_v60  ;;  %v386_v5 = vld [vmem:[#allocation2 + $0x570] sm:$0xff]  ;;  %v395_v8 = vld [vmem:[#allocation2 + $0x5b8] sm:$0xff] }
  0x78   : > { %536 = vmatmul.mubr.f32.vlgmr.msra.gmra.mrb[0].mxu0 %v1729_v16  ;;  %v1349_v15 = vpack.c.bf16 %v321_v10, %v313_v9  ;;  %v393_v6 = vld [vmem:[#allocation2 + $0x5a8] sm:$0xff]  ;;  %v403_v9 = vld [vmem:[#allocation2 + $0x5f8] sm:$0xff] }
  0x79   : > { %607 = vmatmul.mubr.f32.vlgmr.msra.gmra.mrb[0].mxu1 %v1729_v16  ;;  %1328 = vmatpush1.bf16.msra.mxu0 %v1327_v17  ;;  %v312_v17 = vld [vmem:[#allocation2 + $0x320] sm:$0xff] }
  0x7a   : > { %1392 = vmatpush1.bf16.msra.mxu1 %v1391_v18  ;;  %1330 = vmatprep.subr.bf16.mxu0 %v1329_v20  ;;  %v320_v18 = vld [vmem:[#allocation2 + $0x360] sm:$0xff]  ;;  %v314_v20 = vld [vmem:[#allocation2 + $0x330] sm:$0xff] }
  0x7b   : > { %1394 = vmatprep.subr.bf16.mxu1 %v1393_v24  ;;  %677 = vmatprep.mubr.f32.mxu0 %v1733_v19  ;;  %v337_v24 = vld [vmem:[#allocation2 + $0x3e8] sm:$0xff]  ;;  %v1351_v27 = vpack.c.bf16 %v320_v18, %v312_v17  ;;  %v1415_v28 = vpack.c.bf16 %v322_v22, %v314_v20  ;;  %v1433_v17 = vpack.c.bf16 %v403_v9, %v395_v8  ;;  %v402_v18 = vld [vmem:[#allocation2 + $0x5f0] sm:$0xff]  ;;  %v411_v22 = vld [vmem:[#allocation2 + $0x638] sm:$0xff] }
  0x7c   : > { %748 = vmatprep.mubr.f32.mxu1 %v1733_v19  ;;  %v1403_v19 = vpack.c.bf16 %v274_v49, %v266_v47  ;;  %v1353_v29 = vpack.c.bf16 %v337_v24, %v329_v23  ;;  %v361_v47 = vld [vmem:[#allocation2 + $0x4a8] sm:$0xff]  ;;  %v363_v49 = vld [vmem:[#allocation2 + $0x4b8] sm:$0xff] }
  0x7d   : > { %1332 = vmatpush1.bf16.msra.mxu0 %v1331_v30  ;;  %v328_v30 = vld [vmem:[#allocation2 + $0x3a0] sm:$0xff]  ;;  %v1425_v56 = vpack.c.bf16 %v371_v50, %v363_v49  ;;  %v409_v20 = vld [vmem:[#allocation2 + $0x628] sm:$0xff]  ;;  %v419_v23 = vld [vmem:[#allocation2 + $0x678] sm:$0xff] }
  0x7e   : > { %1396 = vmatpush1.bf16.msra.mxu1 %v1395_v31  ;;  %1334 = vmatprep.subr.bf16.mxu0 %v1333_v32  ;;  %v336_v31 = vld [vmem:[#allocation2 + $0x3e0] sm:$0xff]  ;;  %v330_v32 = vld [vmem:[#allocation2 + $0x3b0] sm:$0xff] }
  0x7f   : > { %1398 = vmatprep.subr.bf16.mxu1 %v1397_v36  ;;  %v353_v36 = vld [vmem:[#allocation2 + $0x468] sm:$0xff]  ;;  %v1355_v39 = vpack.c.bf16 %v336_v31, %v328_v30  ;;  %v1419_v40 = vpack.c.bf16 %v338_v34, %v330_v32  ;;  %v1437_v30 = vpack.c.bf16 %v419_v23, %v411_v22  ;;  %v418_v31 = vld [vmem:[#allocation2 + $0x670] sm:$0xff]  ;;  %v427_v34 = vld [vmem:[#allocation2 + $0x6b8] sm:$0xff] }
  0x80   : > { %v1357_v41 = vpack.c.bf16 %v353_v36, %v345_v35  ;;  %v425_v32 = vld [vmem:[#allocation2 + $0x6a8] sm:$0xff]  ;;  %v435_v35 = vld [vmem:[#allocation2 + $0x6f8] sm:$0xff] }
  0x81   : > { %1336 = vmatpush1.bf16.msra.mxu0 %v1335_v42  ;;  %v344_v42 = vld [vmem:[#allocation2 + $0x420] sm:$0xff] }
  0x82   : > { %1400 = vmatpush1.bf16.msra.mxu1 %v1399_v43  ;;  %1338 = vmatprep.subr.bf16.mxu0 %v1337_v44  ;;  %v352_v43 = vld [vmem:[#allocation2 + $0x460] sm:$0xff]  ;;  %v346_v44 = vld [vmem:[#allocation2 + $0x430] sm:$0xff] }
  0x83   : > { %1402 = vmatprep.subr.bf16.mxu1 %v1401_v48  ;;  %v369_v48 = vld [vmem:[#allocation2 + $0x4e8] sm:$0xff]  ;;  %v1359_v51 = vpack.c.bf16 %v352_v43, %v344_v42  ;;  %v1423_v52 = vpack.c.bf16 %v354_v46, %v346_v44  ;;  %v1441_v42 = vpack.c.bf16 %v435_v35, %v427_v34  ;;  %v434_v43 = vld [vmem:[#allocation2 + $0x6f0] sm:$0xff]  ;;  %v443_v46 = vld [vmem:[#allocation2 + $0x738] sm:$0xff] }
  0x84   : > { %v1361_v53 = vpack.c.bf16 %v369_v48, %v361_v47  ;;  %v441_v44 = vld [vmem:[#allocation2 + $0x728] sm:$0xff]  ;;  %v451_v47 = vld [vmem:[#allocation2 + $0x778] sm:$0xff] }
  0x85   : > { %1340 = vmatpush1.bf16.msra.mxu0 %v1339_v54  ;;  %v360_v54 = vld [vmem:[#allocation2 + $0x4a0] sm:$0xff] }
  0x86   : > { %1404 = vmatpush1.bf16.msra.mxu1 %v1403_v19  ;;  %1342 = vmatprep.subr.bf16.mxu0 %v1341_v55  ;;  %v368_v19 = vld [vmem:[#allocation2 + $0x4e0] sm:$0xff]  ;;  %v362_v55 = vld [vmem:[#allocation2 + $0x4b0] sm:$0xff] }
  0x87   : > { %1406 = vmatprep.subr.bf16.mxu1 %v1405_v59  ;;  %v385_v59 = vld [vmem:[#allocation2 + $0x568] sm:$0xff]  ;;  %v1363_v62 = vpack.c.bf16 %v368_v19, %v360_v54  ;;  %v1427_v63 = vpack.c.bf16 %v370_v57, %v362_v55  ;;  %v1445_v54 = vpack.c.bf16 %v451_v47, %v443_v46  ;;  %v450_v19 = vld [vmem:[#allocation2 + $0x770] sm:$0xff]  ;;  %v459_v57 = vld [vmem:[#allocation2 + $0x7b8] sm:$0xff] }
  0x88   : > { %v1365_v0 = vpack.c.bf16 %v385_v59, %v377_v58  ;;  %v457_v55 = vld [vmem:[#allocation2 + $0x7a8] sm:$0xff]  ;;  %v467_v58 = vld [vmem:[#allocation2 + $0x7f8] sm:$0xff] }
  0x89   : > { %1344 = vmatpush1.bf16.msra.mxu0 %v1343_v1  ;;  %v376_v1 = vld [vmem:[#allocation2 + $0x520] sm:$0xff] }
  0x8a   : > { %1408 = vmatpush1.bf16.msra.mxu1 %v1407_v2  ;;  %1346 = vmatprep.subr.bf16.mxu0 %v1345_v3  ;;  %v384_v2 = vld [vmem:[#allocation2 + $0x560] sm:$0xff]  ;;  %v378_v3 = vld [vmem:[#allocation2 + $0x530] sm:$0xff] }
  0x8b   : > { %1410 = vmatprep.subr.bf16.mxu1 %v1409_v7  ;;  %v401_v7 = vld [vmem:[#allocation2 + $0x5e8] sm:$0xff]  ;;  %v1367_v10 = vpack.c.bf16 %v384_v2, %v376_v1  ;;  %v1431_v11 = vpack.c.bf16 %v386_v5, %v378_v3  ;;  %v458_v1 = vld [vmem:[#allocation2 + $0x7b0] sm:$0xff]  ;;  %v1608_v5 = vmov 0.0  }
  0x8c   : > { %v1369_v12 = vpack.c.bf16 %v401_v7, %v393_v6  ;;  %v466_v2 = vld [vmem:[#allocation2 + $0x7f0] sm:$0xff]  ;;  %v756_v6 = vld [vmem:[%s1815_s3] sm:$0xff]  ;;  %v1609_v7 = vmov 0  }
  0x8d   : > { %1348 = vmatpush1.bf16.msra.mxu0 %v1347_v13  ;;  %v392_v13 = vld [vmem:[#allocation2 + $0x5a0] sm:$0xff]  ;;  %1507 = vset.pattern.permute.xlu0 %v1609_v7 }
  0x8e   : > { %1412 = vmatpush1.bf16.msra.mxu1 %v1411_v14  ;;  %1350 = vmatprep.subr.bf16.mxu0 %v1349_v15  ;;  %v400_v14 = vld [vmem:[#allocation2 + $0x5e0] sm:$0xff]  ;;  %v394_v15 = vld [vmem:[#allocation2 + $0x5b0] sm:$0xff] }
  0x8f   : > { %1414 = vmatprep.subr.bf16.mxu1 %v1413_v21  ;;  %v417_v21 = vld [vmem:[#allocation2 + $0x668] sm:$0xff]  ;;  %v1371_v24 = vpack.c.bf16 %v400_v14, %v392_v13  ;;  %v1435_v25 = vpack.c.bf16 %v402_v18, %v394_v15  ;;  %759 = vperm.xlu0 %1507, %v756_v6  }
  0x90   : > { %v1373_v26 = vpack.c.bf16 %v417_v21, %v409_v20 }
  0x91   : > { %1352 = vmatpush1.bf16.msra.mxu0 %v1351_v27  ;;  %v408_v27 = vld [vmem:[#allocation2 + $0x620] sm:$0xff] }
  0x92   : > { %1416 = vmatpush1.bf16.msra.mxu1 %v1415_v28  ;;  %1354 = vmatprep.subr.bf16.mxu0 %v1353_v29  ;;  %v416_v28 = vld [vmem:[#allocation2 + $0x660] sm:$0xff]  ;;  %v410_v29 = vld [vmem:[#allocation2 + $0x630] sm:$0xff] }
  0x93   : > { %1418 = vmatprep.subr.bf16.mxu1 %v1417_v33  ;;  %v433_v33 = vld [vmem:[#allocation2 + $0x6e8] sm:$0xff]  ;;  %v1375_v36 = vpack.c.bf16 %v416_v28, %v408_v27  ;;  %v1439_v37 = vpack.c.bf16 %v418_v31, %v410_v29 }
  0x94   : > { %v1377_v38 = vpack.c.bf16 %v433_v33, %v425_v32 }
  0x95   : > { %1356 = vmatpush1.bf16.msra.mxu0 %v1355_v39  ;;  %v424_v39 = vld [vmem:[#allocation2 + $0x6a0] sm:$0xff] }
  0x96   : > { %1420 = vmatpush1.bf16.msra.mxu1 %v1419_v40  ;;  %1358 = vmatprep.subr.bf16.mxu0 %v1357_v41  ;;  %v432_v40 = vld [vmem:[#allocation2 + $0x6e0] sm:$0xff]  ;;  %v426_v41 = vld [vmem:[#allocation2 + $0x6b0] sm:$0xff] }
  0x97   : > { %1422 = vmatprep.subr.bf16.mxu1 %v1421_v45  ;;  %v449_v45 = vld [vmem:[#allocation2 + $0x768] sm:$0xff]  ;;  %v1379_v48 = vpack.c.bf16 %v432_v40, %v424_v39  ;;  %v1443_v49 = vpack.c.bf16 %v434_v43, %v426_v41 }
  0x98   : > { %v1381_v50 = vpack.c.bf16 %v449_v45, %v441_v44 }
  0x99   : > { %1360 = vmatpush1.bf16.msra.mxu0 %v1359_v51  ;;  %v440_v51 = vld [vmem:[#allocation2 + $0x720] sm:$0xff] }
  0x9a   : > { %1424 = vmatpush1.bf16.msra.mxu1 %v1423_v52  ;;  %1362 = vmatprep.subr.bf16.mxu0 %v1361_v53  ;;  %v448_v52 = vld [vmem:[#allocation2 + $0x760] sm:$0xff]  ;;  %v442_v53 = vld [vmem:[#allocation2 + $0x730] sm:$0xff] }
  0x9b   : > { %1426 = vmatprep.subr.bf16.mxu1 %v1425_v56  ;;  %v465_v56 = vld [vmem:[#allocation2 + $0x7e8] sm:$0xff]  ;;  %v1383_v59 = vpack.c.bf16 %v448_v52, %v440_v51  ;;  %v1447_v60 = vpack.c.bf16 %v450_v19, %v442_v53 }
  0x9c   : > { %v1385_v61 = vpack.c.bf16 %v465_v56, %v457_v55 }
  0x9d   : > { %1364 = vmatpush1.bf16.msra.mxu0 %v1363_v62  ;;  %v456_v62 = vld [vmem:[#allocation2 + $0x7a0] sm:$0xff] }
  0x9e   : > { %1428 = vmatpush1.bf16.msra.mxu1 %v1427_v63  ;;  %1366 = vmatprep.subr.bf16.mxu0 %v1365_v0  ;;  %v464_v63 = vld [vmem:[#allocation2 + $0x7e0] sm:$0xff]  ;;  %v1449_v0 = vpack.c.bf16 %v467_v58, %v459_v57 }
  0x9f   : > { %1430 = vmatprep.subr.bf16.mxu1 %v1429_v4  ;;  %v1387_v3 = vpack.c.bf16 %v464_v63, %v456_v62  ;;  %v1451_v4 = vpack.c.bf16 %v466_v2, %v458_v1 }
  0xa1   : > { %1368 = vmatpush1.bf16.msra.mxu0 %v1367_v10 }
  0xa2   : > { %1432 = vmatpush1.bf16.msra.mxu1 %v1431_v11  ;;  %1370 = vmatprep.subr.bf16.mxu0 %v1369_v12  ;;  %v755_v11 = vld [vmem:[%s1814_s2] sm:$0xff] }
  0xa3   : > { %1434 = vmatprep.subr.bf16.mxu1 %v1433_v17 }
  0xa5   : > { %1372 = vmatpush1.bf16.msra.mxu0 %v1371_v24 }
  0xa6   : > { %1436 = vmatpush1.bf16.msra.mxu1 %v1435_v25  ;;  %1374 = vmatprep.subr.bf16.mxu0 %v1373_v26 }
  0xa7   : > { %1438 = vmatprep.subr.bf16.mxu1 %v1437_v30 }
  0xa9   : > { %1376 = vmatpush1.bf16.msra.mxu0 %v1375_v36 }
  0xaa   : > { %1440 = vmatpush1.bf16.msra.mxu1 %v1439_v37  ;;  %1378 = vmatprep.subr.bf16.mxu0 %v1377_v38 }
  0xab   : > { %1442 = vmatprep.subr.bf16.mxu1 %v1441_v42 }
  0xad   : > { %1380 = vmatpush1.bf16.msra.mxu0 %v1379_v48 }
  0xae   : > { %1444 = vmatpush1.bf16.msra.mxu1 %v1443_v49  ;;  %1382 = vmatprep.subr.bf16.mxu0 %v1381_v50 }
  0xaf   : > { %1446 = vmatprep.subr.bf16.mxu1 %v1445_v54 }
  0xb1   : > { %1384 = vmatpush1.bf16.msra.mxu0 %v1383_v59 }
  0xb2   : > { %1448 = vmatpush1.bf16.msra.mxu1 %v1447_v60  ;;  %1386 = vmatprep.subr.bf16.mxu0 %v1385_v61 }
  0xb3   : > { %1450 = vmatprep.subr.bf16.mxu1 %v1449_v0 }
  0xb5   : > { %1388 = vmatpush1.bf16.msra.mxu0 %v1387_v3 }
  0xb6   : > { %1452 = vmatpush1.bf16.msra.mxu1 %v1451_v4 }
  0xb8   : > { %678 = vmatmul.mubr.f32.vlgmr.msra.gmra.mrb[2].mxu0 %v1729_v16 }
  0xb9   : > { %749 = vmatmul.mubr.f32.vlgmr.msra.gmra.mrb[2].mxu1 %v1729_v16  ;;  %855 = vmatprep.mubr.f32.mxu0 %v1608_v5 }
  0xba   : > { %926 = vmatprep.mubr.f32.mxu1 %v1608_v5 }
 0x10e   : > { %v760_v17 = vpop.permute.xlu0 %759 }
 0x14b   : > { %v537_v8 = vpop.f32.mrb[0].mxu0 }
 0x14c   : > { %v608_v9 = vpop.f32.mrb[0].mxu1  ;;  %v539_v10 = vpop.f32.mrb[1].mxu0 }
 0x14d   : > { %v610_v16 = vpop.f32.mrb[1].mxu1  ;;  %1178 = vmatprep.subr.msk.mxu0 %vm766_vm0, %v539_v10 }
 0x14e   : > { %1181 = vmatprep.subr.msk.mxu1 %vm766_vm0, %v610_v16  ;;  %1179 = vmatpush1.msk.msra.mxu0 %vm766_vm0, %v537_v8 }
 0x14f   : > { %1182 = vmatpush1.msk.msra.mxu1 %vm766_vm0, %v608_v9  ;;  %1180 = vmatmul.mubr.msk.f32.vlgmr.msra.gmra.mrb[4].mxu0 %vm762_vm1, %v755_v11 }
 0x150   : > { %1183 = vmatmul.mubr.msk.f32.vlgmr.msra.gmra.mrb[4].mxu1 %vm762_vm1, %v755_v11  ;;  %997 = vmatprep.mubr.f32.mxu0 %v1608_v5 }
 0x151   : > { %1068 = vmatprep.mubr.f32.mxu1 %v1608_v5 }
 0x18b   : > { %v679_v12 = vpop.f32.mrb[2].mxu0 }
 0x18c   : > { %v750_v13 = vpop.f32.mrb[2].mxu1  ;;  %v681_v14 = vpop.f32.mrb[3].mxu0 }
 0x18d   : > { %v752_v15 = vpop.f32.mrb[3].mxu1  ;;  %1184 = vmatprep.subr.msk.mxu0 %vm766_vm0, %v681_v14 }
 0x18e   : > { %1187 = vmatprep.subr.msk.mxu1 %vm766_vm0, %v752_v15  ;;  %1185 = vmatpush1.msk.msra.mxu0 %vm766_vm0, %v679_v12 }
 0x18f   : > { %1188 = vmatpush1.msk.msra.mxu1 %vm766_vm0, %v750_v13  ;;  %1186 = vmatmul.mubr.msk.f32.vlgmr.msra.gmra.mrb[6].mxu0 %vm762_vm1, %v755_v11 }
 0x190   : > { %1189 = vmatmul.mubr.msk.f32.vlgmr.msra.gmra.mrb[6].mxu1 %vm762_vm1, %v755_v11 }
 0x222   : > { %v857_v18 = vpop.f32.mrb[4].mxu0 }
 0x223   : > { %v928_v20 = vpop.f32.mrb[4].mxu1  ;;  %v858_v21 = vadd.f32 %v857_v18, %v760_v17  ;;  %v859_v22 = vpop.f32.mrb[5].mxu0 }
 0x224   : > { %v929_v23 = vadd.f32 %v928_v20, %v760_v17  ;;  %v860_v24 = vadd.f32 %v859_v22, %v760_v17  ;;  %v930_v25 = vpop.f32.mrb[5].mxu1 }
 0x225   : > { %1075 = vst [vmem:[%s205_s11] sm:$0xff] %v858_v21  ;;  %v931_v26 = vadd.f32 %v930_v25, %v760_v17 }
 0x226   : > { %1077 = vst [vmem:[%s205_s11 + $0x10] sm:$0xff] %v929_v23  ;;  %1076 = vst [vmem:[%s205_s11 + $0x8] sm:$0xff] %v860_v24 }
 0x227   : > { %1078 = vst [vmem:[%s205_s11 + $0x18] sm:$0xff] %v931_v26 }
 0x262   : > { %v999_v27 = vpop.f32.mrb[6].mxu0 }
 0x263   : > { %v1000_v28 = vadd.f32 %v999_v27, %v760_v17  ;;  %v1070_v29 = vpop.f32.mrb[6].mxu1  ;;  %v1001_v30 = vpop.f32.mrb[7].mxu0 }
 0x264   : > { %v1071_v31 = vadd.f32 %v1070_v29, %v760_v17  ;;  %v1002_v32 = vadd.f32 %v1001_v30, %v760_v17  ;;  %v1072_v33 = vpop.f32.mrb[7].mxu1 }
 0x265   : > { %1079 = vst [vmem:[%s205_s11 + $0x20] sm:$0xff] %v1000_v28  ;;  %v1073_v34 = vadd.f32 %v1072_v33, %v760_v17 }
 0x266   : > { %1081 = vst [vmem:[%s205_s11 + $0x30] sm:$0xff] %v1071_v31  ;;  %1080 = vst [vmem:[%s205_s11 + $0x28] sm:$0xff] %v1002_v32 }
 0x267   : > { %1082 = vst [vmem:[%s205_s11 + $0x38] sm:$0xff] %v1073_v34 }
 0x268   : > { %1550 = shalt.err (!%p1547_p7)
}
 0x269   : > { %s1551_s30 = scalar_lea.hbm %s1768_s22, 1024  ;;  %s1555_s7 = scalar_lea.hbm %s1816_s4, 2048 }
 0x26a   : > { %p1552_p8 = scmp.ne.s32.totalorder %s1768_s22, %s1551_s30  ;;  %p1556_p1 = scmp.lt.u32.totalorder %s1768_s22, %s1816_s4 }
 0x26b   : > { %p1557_p0 = scmp.lt.u32.totalorder %s1555_s7, %s1551_s30  ;;  %p1559_p6 = scmp.lt.u32.totalorder %s1551_s30, %s1768_s22 }
 0x26c   : > { %p1553_p11 = pnand %p1552_p8, %p1827_p9 }
 0x26d   : > { %p1558_p5 = por %p1557_p0, %p1556_p1 }
 0x26e   : > { %p1554_p13 = pneg %p1553_p11 }
 0x26f   : > { %p1560_p10 = por %p1559_p6, %p1558_p5 }
 0x271   : > { %p1561_p12 = pnand %p1560_p10, %p1554_p13 }
 0x273   : > { %1564 = shalt.err (!%p1561_p12)
}
 0x274   : > { %1457 = dma.vmem_to_hbm [thread:$0]  (%p1827_p9), %s1770_s13, 1024, %s1768_s22, %s1084_s19  }
 0x275 PF: > { %p1469_p2 = scmp.ge.s32.totalorder %s1603_s18, 2  ;;  %s1110_s10 = sand.u32 1, %s1591_s15  }
 0x276   : > { %p1828_p3 = scmp.ne.s32.totalorder %s1821_s26, 0  ;;  %s1111_s11 = scalar_lea.sflag [#allocation4], %s1110_s10 }
 0x278   : > { %p1464_p4 = pnand %p1469_p2, %p1828_p3 }
 0x27a   : > { %1586 = dma.done.wait (!%p1464_p4), %s1111_s11, 1024  }
 0x27b   : > { %1588 = vsyncadd (!%p1464_p4), %s1111_s11, 4294966272  ;;  %p15_p7 = scmp.ge.s32.totalorder %s1661_s21, 4   ;;  %s1829_s15 = smov %s1595_s16 }
 0x27c   : > { %s1830_s16 = smov %s1599_s17  ;;  %s1831_s17 = smov %s1672_s24 }
 0x27d   : > { %s1832_s18 = smov %s1661_s21  ;;  %17 = sbr.rel (!%p15_p7) target bundleno = 4 (0x4), region = 76 }
 0x284   :  { %1116 = vsyncpa [#allocation3], 1 }
 0x285   :  { %1118 = vsyncpa [#allocation3 + $0x1], 1 }
 0x286   :  { %1119 = vsyncpa [#allocation4], 1 }
 0x287   :  { %1121 = vsyncpa [#allocation4 + $0x1], 1 }

</bundles_post_ra>
